<compile_context>
chip_gen: v7x
topology: tpu7x:2x2x1
jax: 0.10.0
libtpu: 0.0.40
codegen_flags: <defaults>
</compile_context>

<pallas_src>
import jax
import jax.numpy as jnp
from jax.experimental import pallas as pl
from jax.experimental.pallas import tpu as pltpu

EMB_DIM = 16                               # emb_dimension in the PyTorch module
_VOCAB_CHUNK = 128                         # in-kernel vocab tile (one-hot chunk <= 32 vregs)
_RESIDENT_TABLE_CAP = 16 * 1024 * 1024     # beyond this the O(V*B) one-hot compute loses to row DMAs
_VMEM_HEADROOM = 8 * 1024 * 1024           # pipeline buffers + internal scratch allowance
_FALLBACK_ROWS = 64                        # rows gathered per grid step on the large-table path


def _round_up(x, m):
    return (x + m - 1) // m * m


def _vmem_budget_bytes():
    """Generation-aware usable VMEM (v5e/v6e: 128 MiB, v7x: 64 MiB per TensorCore)."""
    try:
        cap = int(pltpu.get_tpu_info().vmem_capacity_bytes)
    except Exception:
        cap = 64 * 1024 * 1024             # conservative default (v7x per-TC VMEM)
    return (cap * 3) // 4                  # leave room for compiler-internal scratch


# --------------------------------------------------------------------------------------
# Primary kernel: VMEM-resident transposed table, vocab-tiled one-hot MXU gather.
# --------------------------------------------------------------------------------------
def _onehot_gather_kernel(ids_ref, table_ref, out_ref):
    # ids_ref:   (1, TB)   int32, lane-major ids for this batch block
    # table_ref: (D, Vp)   f32 transposed table, VMEM-resident (constant block index)
    # out_ref:   (D, TB)   f32 lane-dense output block (batch on the 128-lane axis)
    d, v_pad = table_ref.shape
    tb = out_ref.shape[1]
    vk = _VOCAB_CHUNK
    nk = v_pad // vk
    ids = ids_ref[...]                                            # (1, TB) int32

    def body(k, acc):
        start = pl.multiple_of(k * vk, vk)
        tchunk = table_ref[:, pl.ds(start, vk)]                   # (D, VK)
        vocab = jax.lax.broadcasted_iota(jnp.int32, (vk, tb), 0) + k * vk
        onehot = (vocab == ids).astype(jnp.float32)               # (VK, TB), exact 0/1
        # (D, VK) @ (VK, TB) on the MXU; f32 keeps the gather bit-exact vs the reference.
        return acc + jnp.dot(tchunk, onehot, preferred_element_type=jnp.float32)

    acc = jax.lax.fori_loop(0, nk, body, jnp.zeros((d, tb), jnp.float32))
    out_ref[...] = acc.astype(out_ref.dtype)


# --------------------------------------------------------------------------------------
# Fallback kernel: table in HBM, R rows per grid step via manual overlapped row DMAs.
# --------------------------------------------------------------------------------------
def _row_dma_gather_kernel(ids_ref, table_hbm, out_ref, sems):
    # ids_ref:   SMEM (B_pad,) int32 (scalar-prefetched ids)
    # table_hbm: (V, D) embedding table left in HBM (memory_space=pl.ANY)
    # out_ref:   (R, D) VMEM output block; rows are DMA'd straight into it
    # sems:      (R,) DMA semaphores
    rows = out_ref.shape[0]
    base = pl.program_id(0) * rows

    def issue(r, carry):
        row = ids_ref[base + r]
        pltpu.make_async_copy(table_hbm.at[row], out_ref.at[r], sems.at[r]).start()
        return carry

    jax.lax.fori_loop(0, rows, issue, 0)

    def wait(r, carry):
        pltpu.make_async_copy(table_hbm.at[0], out_ref.at[r], sems.at[r]).wait()
        return carry

    jax.lax.fori_loop(0, rows, wait, 0)
    # TODO(synk): double-buffer the row DMAs across grid steps (manual P4) to hide HBM latency.


# --------------------------------------------------------------------------------------
# Wrapper
# --------------------------------------------------------------------------------------
@jax.jit
def embedding_lookup(id_num, table):
    """Pallas equivalent of context_embeddings(id_num) -> (B, D)."""
    ids = jnp.asarray(id_num, jnp.int32)
    B = ids.shape[0]
    V, D = table.shape

    # torch.nn.Embedding raises on out-of-range ids; clamp deterministically instead.
    ids = jnp.clip(ids, 0, V - 1)

    itemsize = jnp.dtype(table.dtype).itemsize
    v_pad = _round_up(V, _VOCAB_CHUNK)
    table_t_bytes = D * v_pad * itemsize
    budget = _vmem_budget_bytes()
    # Pallas double-buffers inputs by default, so budget 2x the resident table.
    resident_need = 2 * table_t_bytes + _VMEM_HEADROOM

    if resident_need <= budget and table_t_bytes <= _RESIDENT_TABLE_CAP:
        # ---- primary path: VMEM-resident transposed table, lane-dense one-hot MXU gather ----
        if B <= 128:
            tb = _round_up(B, 8)           # single block; block equals full (padded) dims
        elif B <= 1024:
            tb = 128                       # lane-dense, >=2 grid steps (v7x 2-TC split)
        else:
            tb = 256                       # fills the 256-wide MXU N dim on v6e/v7x
        b_pad = _round_up(B, tb)

        ids_pad = jnp.pad(ids, (0, b_pad - B)).reshape(1, b_pad)   # lane-major ids
        table_t = jnp.pad(table.T, ((0, 0), (0, v_pad - V)))       # (D, Vp); pad cols never selected

        vmem_limit = int(min(max(resident_need, 32 * 1024 * 1024), budget))

        out_t = pl.pallas_call(
            _onehot_gather_kernel,
            out_shape=jax.ShapeDtypeStruct((D, b_pad), table.dtype),
            grid=(b_pad // tb,),
            in_specs=[
                pl.BlockSpec((1, tb), lambda i: (0, i)),       # ids: lane-major block
                pl.BlockSpec((D, v_pad), lambda i: (0, 0)),    # table: constant index => DMA'd once
            ],
            out_specs=pl.BlockSpec((D, tb), lambda i: (0, i)),  # lane-dense output (batch on lanes)
            compiler_params=pltpu.CompilerParams(
                dimension_semantics=("parallel",),
                vmem_limit_bytes=vmem_limit,
            ),
        )(ids_pad, table_t)
        return out_t[:, :B].T                                   # un-transpose the tiny (D, B) slab

    # ---- fallback: table stays in HBM; gather R rows per grid step with manual DMAs ----
    rows = _FALLBACK_ROWS if B > _FALLBACK_ROWS else _round_up(B, 8)
    b_pad = _round_up(B, rows)
    ids_pad = jnp.pad(ids, (0, b_pad - B))

    out = pl.pallas_call(
        _row_dma_gather_kernel,
        out_shape=jax.ShapeDtypeStruct((b_pad, D), table.dtype),
        grid_spec=pltpu.PrefetchScalarGridSpec(
            num_scalar_prefetch=1,                              # ids land in SMEM
            grid=(b_pad // rows,),
            in_specs=[pl.BlockSpec(memory_space=pl.ANY)],       # table stays in HBM
            out_specs=pl.BlockSpec((rows, D), lambda i, ids: (i, 0)),
            scratch_shapes=[pltpu.SemaphoreType.DMA((rows,))],
        ),
        compiler_params=pltpu.CompilerParams(
            dimension_semantics=("parallel",),                  # blocks independent; 2-TC on v7x
        ),
    )(ids_pad, table)
    return out[:B]


class HyperNetwork:
    """JAX/Pallas port of the PyTorch HyperNetwork module."""

    def __init__(self, num_vids, key):
        initrange = 0.5 / EMB_DIM
        self.context_embeddings = jax.random.uniform(
            key, (num_vids, EMB_DIM), dtype=jnp.float32,
            minval=-initrange, maxval=initrange,
        )

    def forward(self, id_num, batchsize):
        # Mirrors the PyTorch side-effect; no compute.
        self.batchsize = batchsize
        return embedding_lookup(id_num, self.context_embeddings)


if __name__ == "__main__":
    key = jax.random.PRNGKey(0)
    k_emb, k_ids, k_emb2, k_ids2 = jax.random.split(key, 4)

    # Small shapes consistent with the module.
    num_vids = 32
    batchsize = 8
    net = HyperNetwork(num_vids, k_emb)
    id_num = jax.random.randint(k_ids, (batchsize,), 0, num_vids, dtype=jnp.int32)

    out = jax.block_until_ready(net.forward(id_num, batchsize))
    ref = net.context_embeddings[id_num]
    assert out.shape == (batchsize, EMB_DIM), out.shape
    assert jnp.allclose(out, ref, atol=1e-6), "Pallas gather mismatch vs reference (small)"

    # A second case exercising the multi-block, vocab-tiled, lane-dense path.
    num_vids2, batch2 = 200, 300
    net2 = HyperNetwork(num_vids2, k_emb2)
    ids2 = jax.random.randint(k_ids2, (batch2,), 0, num_vids2, dtype=jnp.int32)
    out2 = jax.block_until_ready(net2.forward(ids2, batch2))
    ref2 = net2.context_embeddings[ids2]
    assert out2.shape == (batch2, EMB_DIM), out2.shape
    assert jnp.allclose(out2, ref2, atol=1e-6), "Pallas gather mismatch vs reference (blocked)"

    print("KERNEL_OK")
</pallas_src>

<mosaic_0001>
module attributes {stable_mosaic.version = 11 : i64} {
  func.func @_onehot_gather_kernel(%arg0: i32, %arg1: memref<1x8xi32, #tpu.memory_space<vmem>>, %arg2: memref<16x128xf32, #tpu.memory_space<vmem>>, %arg3: memref<16x8xf32, #tpu.memory_space<vmem>>) attributes {dimension_semantics = [#tpu.dimension_semantics<parallel>], iteration_bounds = array<i64: 1>, scalar_prefetch = 0 : i64, scratch_operands = 0 : i64, tpu.core_type = #tpu.core_type<tc>, window_params = [{transform_indices = @transform_0, window_bounds = array<i64: 1, 8>}, {pipeline_mode = #tpu.pipeline_mode<synchronous>, transform_indices = @transform_1, window_bounds = array<i64: 16, 128>}, {transform_indices = @transform_2, window_bounds = array<i64: 16, 8>}]} {
    %c0 = arith.constant 0 : index
    %c0_0 = arith.constant 0 : index
    %0 = vector.load %arg1[%c0, %c0_0] : memref<1x8xi32, #tpu.memory_space<vmem>>, vector<1x8xi32>
    %cst = arith.constant 0.000000e+00 : f32
    %1 = vector.broadcast %cst : f32 to vector<16x8xf32>
    %c0_i32 = arith.constant 0 : i32
    %c128_i32 = arith.constant 128 : i32
    %2 = arith.muli %c0_i32, %c128_i32 : i32
    %3 = tpu.assume_multiple %2, 128 : i32
    %c0_1 = arith.constant 0 : index
    %4 = arith.index_cast %3 : i32 to index
    %5 = vector.load %arg2[%c0_1, %4] : memref<16x128xf32, #tpu.memory_space<vmem>>, vector<16x128xf32>
    %6 = tpu.iota {dimensions = array<i32: 0>} : vector<128x8xi32>
    %c128_i32_2 = arith.constant 128 : i32
    %7 = arith.muli %c0_i32, %c128_i32_2 : i32
    %8 = vector.broadcast %7 : i32 to vector<128x8xi32>
    %9 = arith.addi %6, %8 : vector<128x8xi32>
    %10 = vector.broadcast %0 : vector<1x8xi32> to vector<128x8xi32>
    %11 = arith.cmpi eq, %9, %10 : vector<128x8xi32>
    %12 = arith.extui %11 : vector<128x8xi1> to vector<128x8xi32>
    %13 = arith.sitofp %12 : vector<128x8xi32> to vector<128x8xf32>
    %cst_3 = arith.constant dense<0.000000e+00> : vector<16x8xf32>
    %14 = tpu.matmul %5, %13, %cst_3 {dimension_numbers = #tpu.dot_dimension_numbers<[1], [0], [0], [1], [0, 0, 1, 1], [], []>} : vector<16x128xf32>, vector<128x8xf32>, vector<16x8xf32> -> vector<16x8xf32>
    %15 = arith.addf %1, %14 : vector<16x8xf32>
    %c1_i32 = arith.constant 1 : i32
    %c0_4 = arith.constant 0 : index
    %c0_5 = arith.constant 0 : index
    %16 = vector.load %arg3[%c0_4, %c0_5] : memref<16x8xf32, #tpu.memory_space<vmem>>, vector<16x8xf32>
    tpu.vector_store %arg3[%c0_4, %c0_5], %15 {strides = array<i32>} : memref<16x8xf32, #tpu.memory_space<vmem>>, vector<16x8xf32>,
    return
  }
  func.func @transform_0(%arg0: i32) -> (i32, i32) {
    %c0_i32 = arith.constant 0 : i32
    %c0_i32_0 = arith.constant 0 : i32
    return %c0_i32, %arg0 : i32, i32
  }
  func.func @transform_1(%arg0: i32) -> (i32, i32) {
    %c0_i32 = arith.constant 0 : i32
    %c0_i32_0 = arith.constant 0 : i32
    %c0_i32_1 = arith.constant 0 : i32
    return %c0_i32, %c0_i32_0 : i32, i32
  }
  func.func @transform_2(%arg0: i32) -> (i32, i32) {
    %c0_i32 = arith.constant 0 : i32
    %c0_i32_0 = arith.constant 0 : i32
    return %c0_i32, %arg0 : i32, i32
  }
}

</mosaic_0001>

<bundles_post_ra>
// kernel: embedding_lookup.1
= control target key start
LH: loop header
LB: loop body
LE: loop exit
PB: predicated region body
PF: predicated region fallthrough
CT: control target
= control target key end

     0   :  { %v14_v0 = vlaneseq  ;;  %v284_v9 = vmov 1.0|1.0   ;;  %s315_s0 = inlined_call_operand.vmem [shape: s32[1,8], index: 0, kind: input, shape index: {}]   ;;  %s316_s1 = inlined_call_operand.vmem [shape: f32[16,128], index: 1, kind: input, shape index: {}]   ;;  %s317_s2 = inlined_call_operand.vmem [shape: f32[16,8], index: 2, kind: output, shape index: {}]  }
   0x1   :  { %v165_v1 = vld [vmem:[%s315_s0] ss:$0 sm:$0xff]  ;;  %v13_v20 = vld [vmem:[%s316_s1 + $0x8] sm:$0xff] }
   0x2   :  { %v12_v2 = vld [vmem:[%s316_s1] sm:$0xff]  ;;  %v15_v3 = vshrl.u32 %v14_v0, 7 }
   0x3   :  { %248 = vmatprep.mubr.f32.mxu0 %v12_v2 }
   0x4   :  { %v16_v4 = vadd.s32 8, %v15_v3  ;;  %vm35_vm0 = vcmp.eq.s32.totalorder %v15_v3, %v165_v1  ;;  %v17_v5 = vadd.s32 16, %v15_v3  ;;  %v18_v6 = vadd.s32 24, %v15_v3 }
   0x5   :  { %v19_v7 = vadd.s32 32, %v15_v3  ;;  %v20_v8 = vadd.s32 40, %v15_v3  ;;  %v21_v10 = vadd.s32 48, %v15_v3  ;;  %v22_v11 = vadd.s32 56, %v15_v3 }
   0x6   :  { %vm36_vm1 = vcmp.eq.s32.totalorder %v16_v4, %v165_v1  ;;  %vm37_vm2 = vcmp.eq.s32.totalorder %v17_v5, %v165_v1  ;;  %vm38_vm3 = vcmp.eq.s32.totalorder %v18_v6, %v165_v1  ;;  %v23_v12 = vadd.s32 64, %v15_v3 }
   0x7   :  { %vm251_vm4 = vmpackc.low %vm36_vm1, %vm35_vm0  ;;  %vm39_vm6 = vcmp.eq.s32.totalorder %v19_v7, %v165_v1  ;;  %vm40_vm7 = vcmp.eq.s32.totalorder %v20_v8, %v165_v1  ;;  %vm41_vm9 = vcmp.eq.s32.totalorder %v21_v10, %v165_v1  ;;  %vm42_vm10 = vcmp.eq.s32.totalorder %v22_v11, %v165_v1 }
   0x8   :  { %252 = vmatprep.subr.msk.bf16.mxu0 %vm251_vm4, %v284_v9  ;;  %vm255_vm5 = vmpackc.low %vm38_vm3, %vm37_vm2  ;;  %v24_v13 = vadd.s32 72, %v15_v3  ;;  %vm43_vm12 = vcmp.eq.s32.totalorder %v23_v12, %v165_v1  ;;  %v25_v14 = vadd.s32 80, %v15_v3  ;;  %v26_v15 = vadd.s32 88, %v15_v3 }
   0x9   :  { %254 = vmatpush3.bf16.msk.msra.mxu0 %vm251_vm4, %v284_v9  ;;  %vm259_vm8 = vmpackc.low %vm40_vm7, %vm39_vm6  ;;  %v27_v16 = vadd.s32 96, %v15_v3  ;;  %v28_v17 = vadd.s32 104, %v15_v3  ;;  %v29_v18 = vadd.s32 112, %v15_v3  ;;  %v30_v19 = vadd.s32 120, %v15_v3 }
   0xa   :  { %256 = vmatprep.subr.msk.bf16.mxu0 %vm255_vm5, %v284_v9  ;;  %vm263_vm11 = vmpackc.low %vm42_vm10, %vm41_vm9  ;;  %vm44_vm13 = vcmp.eq.s32.totalorder %v24_v13, %v165_v1  ;;  %vm45_vm15 = vcmp.eq.s32.totalorder %v25_v14, %v165_v1  ;;  %vm46_vm0 = vcmp.eq.s32.totalorder %v26_v15, %v165_v1 }
   0xb   :  { %vm267_vm14 = vmpackc.low %vm44_vm13, %vm43_vm12  ;;  %vm47_vm2 = vcmp.eq.s32.totalorder %v27_v16, %v165_v1  ;;  %vm48_vm3 = vcmp.eq.s32.totalorder %v28_v17, %v165_v1  ;;  %vm50_vm6 = vcmp.eq.s32.totalorder %v30_v19, %v165_v1 }
   0xc   :  { %vm271_vm1 = vmpackc.low %vm46_vm0, %vm45_vm15 }
   0xd   :  { %258 = vmatpush3.bf16.msk.msra.mxu0 %vm255_vm5, %v284_v9  ;;  %vm275_vm4 = vmpackc.low %vm48_vm3, %vm47_vm2  ;;  %vm49_vm5 = vcmp.eq.s32.totalorder %v29_v18, %v165_v1 }
   0xe   :  { %260 = vmatprep.subr.msk.bf16.mxu0 %vm259_vm8, %v284_v9  ;;  %vm279_vm7 = vmpackc.low %vm50_vm6, %vm49_vm5 }
  0x11   :  { %262 = vmatpush3.bf16.msk.msra.mxu0 %vm259_vm8, %v284_v9  ;;  %vm158_vm8 = vcmask 64512  }
  0x12   :  { %264 = vmatprep.subr.msk.bf16.mxu0 %vm263_vm11, %v284_v9 }
  0x15   :  { %266 = vmatpush3.bf16.msk.msra.mxu0 %vm263_vm11, %v284_v9 }
  0x16   :  { %268 = vmatprep.subr.msk.bf16.mxu0 %vm267_vm14, %v284_v9 }
  0x19   :  { %270 = vmatpush3.bf16.msk.msra.mxu0 %vm267_vm14, %v284_v9 }
  0x1a   :  { %272 = vmatprep.subr.msk.bf16.mxu0 %vm271_vm1, %v284_v9 }
  0x1d   :  { %274 = vmatpush3.bf16.msk.msra.mxu0 %vm271_vm1, %v284_v9 }
  0x1e   :  { %276 = vmatprep.subr.msk.bf16.mxu0 %vm275_vm4, %v284_v9 }
  0x21   :  { %278 = vmatpush3.bf16.msk.msra.mxu0 %vm275_vm4, %v284_v9 }
  0x22   :  { %280 = vmatprep.subr.msk.bf16.mxu0 %vm279_vm7, %v284_v9 }
  0x25   :  { %282 = vmatpush3.bf16.msk.msra.mxu0 %vm279_vm7, %v284_v9 }
  0x28   :  { %249 = vmatmul.mubr.f32.vlgmr.msra.gmra.mrb[0].mxu0 %v13_v20 }
  0xfb   :  { %v250_v21 = vpop.f32.mrb[0].mxu0 }
  0xfc   :  { %160 = vst.msk [vmem:[%s317_s2 + $0x8] sm:$0xff] %vm158_vm8, %v250_v21  ;;  %v149_v22 = vpop.f32.mrb[1].mxu0 }
  0xfd   :  { %159 = vst.msk [vmem:[%s317_s2] sm:$0xff] %vm158_vm8, %v149_v22 }

</bundles_post_ra>
